<compile_context>
chip_gen: v7x
topology: tpu7x:2x2x1
jax: 0.10.0
libtpu: 0.0.40
codegen_flags: <defaults>
</compile_context>

<pallas_src>
import jax
import jax.numpy as jnp
import numpy as np
from jax.experimental import pallas as pl
from jax.experimental.pallas import tpu as pltpu


def classifier_kernel(ids_ref,            # SMEM  [T_pad]      scalar-prefetched token ids
                      seg_ref,            # VMEM  [TK, B]      segment weights (1/count folded in)
                      emb_hbm,            # HBM   [V, D]       raw embedding table (pl.ANY)
                      w_ref,              # VMEM  [D, C_pad]   fc weight, transposed + lane-padded
                      b_ref,              # VMEM  [1, C_pad]   fc bias, lane-padded
                      out_ref,            # VMEM  [B, C_pad]   logits (lane-dense)
                      gbuf,               # VMEM scratch [TK, D]  gathered embedding rows
                      pooled,             # VMEM scratch [B, D]   segment-sum accumulator
                      sems):              # DMA semaphores [TK]
    t = pl.program_id(0)
    TK = gbuf.shape[0]

    @pl.when(t == 0)
    def _():
        pooled[...] = jnp.zeros_like(pooled)

    # --- fused gather: DMA this tile's TK embedding rows straight from HBM ---
    base = t * TK
    copies = []
    for i in range(TK):                                   # static unroll (TK is small)
        row = ids_ref[base + i]
        cp = pltpu.make_async_copy(emb_hbm.at[pl.ds(row, 1)],   # [1, D] HBM view
                                   gbuf.at[pl.ds(i, 1)],        # [1, D] VMEM row
                                   sems.at[i])
        copies.append(cp)
        cp.start()
    for cp in copies:
        cp.wait()

    # --- segment mean-pool accumulation (1/count already folded into seg) ---
    # pooled[B, D] += seg_tile[TK, B]^T @ emb_tile[TK, D]   (MXU, f32 accumulate)
    pooled[...] += jax.lax.dot_general(
        seg_ref[...], gbuf[...],
        dimension_numbers=(((0,), (0,)), ((), ())),
        preferred_element_type=jnp.float32)

    # --- finalize: Linear layer on the last token tile ---
    @pl.when(t == pl.num_programs(0) - 1)
    def _():
        out_ref[...] = (jnp.dot(pooled[...], w_ref[...],
                                preferred_element_type=jnp.float32)
                        + b_ref[...])


def simple_text_classifier(text, offsets, emb_table, fc_w, fc_b, *, token_tile=8):
    """EmbeddingBag(mean) + Linear.

    text:    [T] int32 flat token ids
    offsets: [B] int32 bag start positions (assumed sorted ascending, bags
             partition [0, T) — same contract as nn.EmbeddingBag).
    """
    T = text.shape[0]
    B = offsets.shape[0]
    V, D = emb_table.shape
    C = fc_w.shape[0]

    TK = token_tile                       # tokens per grid step (multiple of 8)
    T_pad = pl.cdiv(T, TK) * TK
    C_pad = pl.cdiv(C, 128) * 128         # lane-dense output

    # ---- glue (plain JAX): segment weights with the mean scale folded in ----
    ends = jnp.concatenate([offsets[1:], jnp.array([T], dtype=offsets.dtype)])
    counts = (ends - offsets).astype(jnp.float32)
    inv_cnt = jnp.where(counts > 0, 1.0 / counts, 0.0)                 # [B]
    tok = jnp.arange(T_pad, dtype=jnp.int32)
    seg_t = (((tok[:, None] >= offsets[None, :]) &
              (tok[:, None] < ends[None, :])).astype(jnp.float32)
             * inv_cnt[None, :])                                       # [T_pad, B]
    text_pad = jnp.zeros((T_pad,), jnp.int32).at[:T].set(text.astype(jnp.int32))
    w_pad = jnp.zeros((D, C_pad), jnp.float32).at[:, :C].set(fc_w.T)   # [D, C_pad]
    b_pad = jnp.zeros((1, C_pad), jnp.float32).at[:, :C].set(fc_b[None, :])

    grid = (T_pad // TK,)

    out = pl.pallas_call(
        classifier_kernel,
        out_shape=jax.ShapeDtypeStruct((B, C_pad), jnp.float32),
        grid_spec=pltpu.PrefetchScalarGridSpec(
            num_scalar_prefetch=1,                       # token ids -> SMEM
            grid=grid,
            in_specs=[
                pl.BlockSpec((TK, B), lambda t, ids: (t, 0)),        # seg tile
                pl.BlockSpec(memory_space=pl.ANY),                   # emb table stays in HBM
                pl.BlockSpec((D, C_pad), lambda t, ids: (0, 0)),     # W^T  (resident)
                pl.BlockSpec((1, C_pad), lambda t, ids: (0, 0)),     # bias (resident)
            ],
            out_specs=pl.BlockSpec((B, C_pad), lambda t, ids: (0, 0)),
            scratch_shapes=[
                pltpu.VMEM((TK, D), jnp.float32),        # gathered embedding rows
                pltpu.VMEM((B, D), jnp.float32),         # pooled accumulator
                pltpu.SemaphoreType.DMA((TK,)),          # per-row gather DMAs
            ],
        ),
        compiler_params=pltpu.CompilerParams(
            dimension_semantics=("arbitrary",)),         # token axis is a reduction
    )(text_pad, seg_t, emb_table, w_pad, b_pad)

    return out[:, :C]


if __name__ == "__main__":
    # small shapes consistent with the module
    vocab_size = 1000
    embed_dim = 64        # fixed by the module spec (a 128-multiple would fill lanes better)
    num_classes = 4
    T = 20                # total flattened tokens
    B = 4                 # number of bags (batch)

    key = jax.random.PRNGKey(0)
    k_emb, k_fcw, k_txt = jax.random.split(key, 3)

    # parameter init matching init_weights(): U(-0.5, 0.5), bias = 0
    initrange = 0.5
    emb_table = jax.random.uniform(k_emb, (vocab_size, embed_dim),
                                   jnp.float32, -initrange, initrange)
    fc_w = jax.random.uniform(k_fcw, (num_classes, embed_dim),
                              jnp.float32, -initrange, initrange)
    fc_b = jnp.zeros((num_classes,), jnp.float32)

    # EmbeddingBag-style inputs: flat text + sorted bag offsets
    text = jax.random.randint(k_txt, (T,), 0, vocab_size, dtype=jnp.int32)
    offsets = jnp.array([0, 5, 9, 14], dtype=jnp.int32)   # bags of len 5, 4, 5, 6

    out = simple_text_classifier(text, offsets, emb_table, fc_w, fc_b)
    out = jax.block_until_ready(out)

    # pure-JAX reference (EmbeddingBag mean + Linear)
    ends = jnp.concatenate([offsets[1:], jnp.array([T], dtype=jnp.int32)])
    emb_tok = emb_table[text]
    ref_rows = [jnp.mean(emb_tok[int(offsets[i]):int(ends[i])], axis=0) for i in range(B)]
    ref = jnp.stack(ref_rows) @ fc_w.T + fc_b

    assert out.shape == (B, num_classes)
    assert np.allclose(np.asarray(out), np.asarray(ref), atol=1e-4), "mismatch vs reference"

    print("KERNEL_OK")
</pallas_src>

<mosaic_0001>
module attributes {stable_mosaic.version = 11 : i64} {
  func.func @classifier_kernel(%arg0: i32, %arg1: memref<24xi32, #tpu.memory_space<smem>>, %arg2: memref<8x4xf32, #tpu.memory_space<vmem>>, %arg3: memref<1000x64xf32, #tpu.memory_space<any>>, %arg4: memref<64x128xf32, #tpu.memory_space<vmem>>, %arg5: memref<1x128xf32, #tpu.memory_space<vmem>>, %arg6: memref<4x128xf32, #tpu.memory_space<vmem>>, %arg7: memref<8x64xf32, #tpu.memory_space<vmem>>, %arg8: memref<4x64xf32, #tpu.memory_space<vmem>>, %arg9: memref<8x!tpu.dma_semaphore, #tpu.memory_space<semaphore_mem>>) attributes {dimension_semantics = [#tpu.dimension_semantics<arbitrary>], iteration_bounds = array<i64: 3>, scalar_prefetch = 1 : i64, scratch_operands = 3 : i64, tpu.core_type = #tpu.core_type<tc>, window_params = [{transform_indices = @transform_0, window_bounds = array<i64: 8, 4>}, {}, {pipeline_mode = #tpu.pipeline_mode<synchronous>, transform_indices = @transform_2, window_bounds = array<i64: 64, 128>}, {pipeline_mode = #tpu.pipeline_mode<synchronous>, transform_indices = @transform_3, window_bounds = array<i64: 1, 128>}, {pipeline_mode = #tpu.pipeline_mode<synchronous>, transform_indices = @transform_4, window_bounds = array<i64: 4, 128>}]} {
    %c0_i32 = arith.constant 0 : i32
    %0 = arith.cmpi eq, %arg0, %c0_i32 : i32
    %1 = arith.extui %0 : i1 to i32
    %c0_i32_0 = arith.constant 0 : i32
    %2 = arith.cmpi ne, %1, %c0_i32_0 : i32
    scf.if %2 {
      %cst_75 = arith.constant 0.000000e+00 : f32
      %101 = vector.broadcast %cst_75 : f32 to vector<4x64xf32>
      %c0_76 = arith.constant 0 : index
      %c0_77 = arith.constant 0 : index
      %102 = vector.load %arg8[%c0_76, %c0_77] : memref<4x64xf32, #tpu.memory_space<vmem>>, vector<4x64xf32>
      tpu.vector_store %arg8[%c0_76, %c0_77], %101 {strides = array<i32>} : memref<4x64xf32, #tpu.memory_space<vmem>>, vector<4x64xf32>,
    } else {
    }
    %c8_i32 = arith.constant 8 : i32
    %3 = arith.muli %arg0, %c8_i32 : i32
    %c0_i32_1 = arith.constant 0 : i32
    %4 = arith.addi %3, %c0_i32_1 : i32
    %5 = arith.index_cast %4 : i32 to index
    %6 = memref.load %arg1[%5] : memref<24xi32, #tpu.memory_space<smem>>
    %c0_i32_2 = arith.constant 0 : i32
    %c0_i32_3 = arith.constant 0 : i32
    %7 = tpu.memref_slice %arg3[%6, %c0_i32_3] : memref<1000x64xf32, #tpu.memory_space<any>> -> memref<1x64xf32, #tpu.memory_space<any>>
    %c0_i32_4 = arith.constant 0 : i32
    %c0_i32_5 = arith.constant 0 : i32
    %8 = tpu.memref_slice %arg7[%c0_i32_4, %c0_i32_5] : memref<8x64xf32, #tpu.memory_space<vmem>> -> memref<1x64xf32, #tpu.memory_space<vmem>>
    %9 = tpu.memref_slice %arg9[%c0_i32_2] : memref<8x!tpu.dma_semaphore, #tpu.memory_space<semaphore_mem>> -> memref<1x!tpu.dma_semaphore, #tpu.memory_space<semaphore_mem>>
    %10 = tpu.memref_squeeze %9 : memref<1x!tpu.dma_semaphore, #tpu.memory_space<semaphore_mem>> -> memref<!tpu.dma_semaphore, #tpu.memory_space<semaphore_mem>>
    tpu.enqueue_dma source(%7 : memref<1x64xf32, #tpu.memory_space<any>>) target(%8 : memref<1x64xf32, #tpu.memory_space<vmem>>) target_semaphore(%10 : memref<!tpu.dma_semaphore, #tpu.memory_space<semaphore_mem>>)
    %c1_i32 = arith.constant 1 : i32
    %11 = arith.addi %3, %c1_i32 : i32
    %12 = arith.index_cast %11 : i32 to index
    %13 = memref.load %arg1[%12] : memref<24xi32, #tpu.memory_space<smem>>
    %c1_i32_6 = arith.constant 1 : i32
    %c0_i32_7 = arith.constant 0 : i32
    %14 = tpu.memref_slice %arg3[%13, %c0_i32_7] : memref<1000x64xf32, #tpu.memory_space<any>> -> memref<1x64xf32, #tpu.memory_space<any>>
    %c1_i32_8 = arith.constant 1 : i32
    %c0_i32_9 = arith.constant 0 : i32
    %15 = tpu.memref_slice %arg7[%c1_i32_8, %c0_i32_9] : memref<8x64xf32, #tpu.memory_space<vmem>> -> memref<1x64xf32, #tpu.memory_space<vmem>>
    %16 = tpu.memref_slice %arg9[%c1_i32_6] : memref<8x!tpu.dma_semaphore, #tpu.memory_space<semaphore_mem>> -> memref<1x!tpu.dma_semaphore, #tpu.memory_space<semaphore_mem>>
    %17 = tpu.memref_squeeze %16 : memref<1x!tpu.dma_semaphore, #tpu.memory_space<semaphore_mem>> -> memref<!tpu.dma_semaphore, #tpu.memory_space<semaphore_mem>>
    tpu.enqueue_dma source(%14 : memref<1x64xf32, #tpu.memory_space<any>>) target(%15 : memref<1x64xf32, #tpu.memory_space<vmem>>) target_semaphore(%17 : memref<!tpu.dma_semaphore, #tpu.memory_space<semaphore_mem>>)
    %c2_i32 = arith.constant 2 : i32
    %18 = arith.addi %3, %c2_i32 : i32
    %19 = arith.index_cast %18 : i32 to index
    %20 = memref.load %arg1[%19] : memref<24xi32, #tpu.memory_space<smem>>
    %c2_i32_10 = arith.constant 2 : i32
    %c0_i32_11 = arith.constant 0 : i32
    %21 = tpu.memref_slice %arg3[%20, %c0_i32_11] : memref<1000x64xf32, #tpu.memory_space<any>> -> memref<1x64xf32, #tpu.memory_space<any>>
    %c2_i32_12 = arith.constant 2 : i32
    %c0_i32_13 = arith.constant 0 : i32
    %22 = tpu.memref_slice %arg7[%c2_i32_12, %c0_i32_13] : memref<8x64xf32, #tpu.memory_space<vmem>> -> memref<1x64xf32, #tpu.memory_space<vmem>>
    %23 = tpu.memref_slice %arg9[%c2_i32_10] : memref<8x!tpu.dma_semaphore, #tpu.memory_space<semaphore_mem>> -> memref<1x!tpu.dma_semaphore, #tpu.memory_space<semaphore_mem>>
    %24 = tpu.memref_squeeze %23 : memref<1x!tpu.dma_semaphore, #tpu.memory_space<semaphore_mem>> -> memref<!tpu.dma_semaphore, #tpu.memory_space<semaphore_mem>>
    tpu.enqueue_dma source(%21 : memref<1x64xf32, #tpu.memory_space<any>>) target(%22 : memref<1x64xf32, #tpu.memory_space<vmem>>) target_semaphore(%24 : memref<!tpu.dma_semaphore, #tpu.memory_space<semaphore_mem>>)
    %c3_i32 = arith.constant 3 : i32
    %25 = arith.addi %3, %c3_i32 : i32
    %26 = arith.index_cast %25 : i32 to index
    %27 = memref.load %arg1[%26] : memref<24xi32, #tpu.memory_space<smem>>
    %c3_i32_14 = arith.constant 3 : i32
    %c0_i32_15 = arith.constant 0 : i32
    %28 = tpu.memref_slice %arg3[%27, %c0_i32_15] : memref<1000x64xf32, #tpu.memory_space<any>> -> memref<1x64xf32, #tpu.memory_space<any>>
    %c3_i32_16 = arith.constant 3 : i32
    %c0_i32_17 = arith.constant 0 : i32
    %29 = tpu.memref_slice %arg7[%c3_i32_16, %c0_i32_17] : memref<8x64xf32, #tpu.memory_space<vmem>> -> memref<1x64xf32, #tpu.memory_space<vmem>>
    %30 = tpu.memref_slice %arg9[%c3_i32_14] : memref<8x!tpu.dma_semaphore, #tpu.memory_space<semaphore_mem>> -> memref<1x!tpu.dma_semaphore, #tpu.memory_space<semaphore_mem>>
    %31 = tpu.memref_squeeze %30 : memref<1x!tpu.dma_semaphore, #tpu.memory_space<semaphore_mem>> -> memref<!tpu.dma_semaphore, #tpu.memory_space<semaphore_mem>>
    tpu.enqueue_dma source(%28 : memref<1x64xf32, #tpu.memory_space<any>>) target(%29 : memref<1x64xf32, #tpu.memory_space<vmem>>) target_semaphore(%31 : memref<!tpu.dma_semaphore, #tpu.memory_space<semaphore_mem>>)
    %c4_i32 = arith.constant 4 : i32
    %32 = arith.addi %3, %c4_i32 : i32
    %33 = arith.index_cast %32 : i32 to index
    %34 = memref.load %arg1[%33] : memref<24xi32, #tpu.memory_space<smem>>
    %c4_i32_18 = arith.constant 4 : i32
    %c0_i32_19 = arith.constant 0 : i32
    %35 = tpu.memref_slice %arg3[%34, %c0_i32_19] : memref<1000x64xf32, #tpu.memory_space<any>> -> memref<1x64xf32, #tpu.memory_space<any>>
    %c4_i32_20 = arith.constant 4 : i32
    %c0_i32_21 = arith.constant 0 : i32
    %36 = tpu.memref_slice %arg7[%c4_i32_20, %c0_i32_21] : memref<8x64xf32, #tpu.memory_space<vmem>> -> memref<1x64xf32, #tpu.memory_space<vmem>>
    %37 = tpu.memref_slice %arg9[%c4_i32_18] : memref<8x!tpu.dma_semaphore, #tpu.memory_space<semaphore_mem>> -> memref<1x!tpu.dma_semaphore, #tpu.memory_space<semaphore_mem>>
    %38 = tpu.memref_squeeze %37 : memref<1x!tpu.dma_semaphore, #tpu.memory_space<semaphore_mem>> -> memref<!tpu.dma_semaphore, #tpu.memory_space<semaphore_mem>>
    tpu.enqueue_dma source(%35 : memref<1x64xf32, #tpu.memory_space<any>>) target(%36 : memref<1x64xf32, #tpu.memory_space<vmem>>) target_semaphore(%38 : memref<!tpu.dma_semaphore, #tpu.memory_space<semaphore_mem>>)
    %c5_i32 = arith.constant 5 : i32
    %39 = arith.addi %3, %c5_i32 : i32
    %40 = arith.index_cast %39 : i32 to index
    %41 = memref.load %arg1[%40] : memref<24xi32, #tpu.memory_space<smem>>
    %c5_i32_22 = arith.constant 5 : i32
    %c0_i32_23 = arith.constant 0 : i32
    %42 = tpu.memref_slice %arg3[%41, %c0_i32_23] : memref<1000x64xf32, #tpu.memory_space<any>> -> memref<1x64xf32, #tpu.memory_space<any>>
    %c5_i32_24 = arith.constant 5 : i32
    %c0_i32_25 = arith.constant 0 : i32
    %43 = tpu.memref_slice %arg7[%c5_i32_24, %c0_i32_25] : memref<8x64xf32, #tpu.memory_space<vmem>> -> memref<1x64xf32, #tpu.memory_space<vmem>>
    %44 = tpu.memref_slice %arg9[%c5_i32_22] : memref<8x!tpu.dma_semaphore, #tpu.memory_space<semaphore_mem>> -> memref<1x!tpu.dma_semaphore, #tpu.memory_space<semaphore_mem>>
    %45 = tpu.memref_squeeze %44 : memref<1x!tpu.dma_semaphore, #tpu.memory_space<semaphore_mem>> -> memref<!tpu.dma_semaphore, #tpu.memory_space<semaphore_mem>>
    tpu.enqueue_dma source(%42 : memref<1x64xf32, #tpu.memory_space<any>>) target(%43 : memref<1x64xf32, #tpu.memory_space<vmem>>) target_semaphore(%45 : memref<!tpu.dma_semaphore, #tpu.memory_space<semaphore_mem>>)
    %c6_i32 = arith.constant 6 : i32
    %46 = arith.addi %3, %c6_i32 : i32
    %47 = arith.index_cast %46 : i32 to index
    %48 = memref.load %arg1[%47] : memref<24xi32, #tpu.memory_space<smem>>
    %c6_i32_26 = arith.constant 6 : i32
    %c0_i32_27 = arith.constant 0 : i32
    %49 = tpu.memref_slice %arg3[%48, %c0_i32_27] : memref<1000x64xf32, #tpu.memory_space<any>> -> memref<1x64xf32, #tpu.memory_space<any>>
    %c6_i32_28 = arith.constant 6 : i32
    %c0_i32_29 = arith.constant 0 : i32
    %50 = tpu.memref_slice %arg7[%c6_i32_28, %c0_i32_29] : memref<8x64xf32, #tpu.memory_space<vmem>> -> memref<1x64xf32, #tpu.memory_space<vmem>>
    %51 = tpu.memref_slice %arg9[%c6_i32_26] : memref<8x!tpu.dma_semaphore, #tpu.memory_space<semaphore_mem>> -> memref<1x!tpu.dma_semaphore, #tpu.memory_space<semaphore_mem>>
    %52 = tpu.memref_squeeze %51 : memref<1x!tpu.dma_semaphore, #tpu.memory_space<semaphore_mem>> -> memref<!tpu.dma_semaphore, #tpu.memory_space<semaphore_mem>>
    tpu.enqueue_dma source(%49 : memref<1x64xf32, #tpu.memory_space<any>>) target(%50 : memref<1x64xf32, #tpu.memory_space<vmem>>) target_semaphore(%52 : memref<!tpu.dma_semaphore, #tpu.memory_space<semaphore_mem>>)
    %c7_i32 = arith.constant 7 : i32
    %53 = arith.addi %3, %c7_i32 : i32
    %54 = arith.index_cast %53 : i32 to index
    %55 = memref.load %arg1[%54] : memref<24xi32, #tpu.memory_space<smem>>
    %c7_i32_30 = arith.constant 7 : i32
    %c0_i32_31 = arith.constant 0 : i32
    %56 = tpu.memref_slice %arg3[%55, %c0_i32_31] : memref<1000x64xf32, #tpu.memory_space<any>> -> memref<1x64xf32, #tpu.memory_space<any>>
    %c7_i32_32 = arith.constant 7 : i32
    %c0_i32_33 = arith.constant 0 : i32
    %57 = tpu.memref_slice %arg7[%c7_i32_32, %c0_i32_33] : memref<8x64xf32, #tpu.memory_space<vmem>> -> memref<1x64xf32, #tpu.memory_space<vmem>>
    %58 = tpu.memref_slice %arg9[%c7_i32_30] : memref<8x!tpu.dma_semaphore, #tpu.memory_space<semaphore_mem>> -> memref<1x!tpu.dma_semaphore, #tpu.memory_space<semaphore_mem>>
    %59 = tpu.memref_squeeze %58 : memref<1x!tpu.dma_semaphore, #tpu.memory_space<semaphore_mem>> -> memref<!tpu.dma_semaphore, #tpu.memory_space<semaphore_mem>>
    tpu.enqueue_dma source(%56 : memref<1x64xf32, #tpu.memory_space<any>>) target(%57 : memref<1x64xf32, #tpu.memory_space<vmem>>) target_semaphore(%59 : memref<!tpu.dma_semaphore, #tpu.memory_space<semaphore_mem>>)
    %c0_i32_34 = arith.constant 0 : i32
    %c0_i32_35 = arith.constant 0 : i32
    %60 = tpu.memref_slice %arg3[%6, %c0_i32_35] : memref<1000x64xf32, #tpu.memory_space<any>> -> memref<1x64xf32, #tpu.memory_space<any>>
    %c0_i32_36 = arith.constant 0 : i32
    %c0_i32_37 = arith.constant 0 : i32
    %61 = tpu.memref_slice %arg7[%c0_i32_36, %c0_i32_37] : memref<8x64xf32, #tpu.memory_space<vmem>> -> memref<1x64xf32, #tpu.memory_space<vmem>>
    %62 = tpu.memref_slice %arg9[%c0_i32_34] : memref<8x!tpu.dma_semaphore, #tpu.memory_space<semaphore_mem>> -> memref<1x!tpu.dma_semaphore, #tpu.memory_space<semaphore_mem>>
    %63 = tpu.memref_squeeze %62 : memref<1x!tpu.dma_semaphore, #tpu.memory_space<semaphore_mem>> -> memref<!tpu.dma_semaphore, #tpu.memory_space<semaphore_mem>>
    tpu.wait_dma2 semaphore(%63 : memref<!tpu.dma_semaphore, #tpu.memory_space<semaphore_mem>>) src(%60 : memref<1x64xf32, #tpu.memory_space<any>>) dst(%61 : memref<1x64xf32, #tpu.memory_space<vmem>>)
    %c1_i32_38 = arith.constant 1 : i32
    %c0_i32_39 = arith.constant 0 : i32
    %64 = tpu.memref_slice %arg3[%13, %c0_i32_39] : memref<1000x64xf32, #tpu.memory_space<any>> -> memref<1x64xf32, #tpu.memory_space<any>>
    %c1_i32_40 = arith.constant 1 : i32
    %c0_i32_41 = arith.constant 0 : i32
    %65 = tpu.memref_slice %arg7[%c1_i32_40, %c0_i32_41] : memref<8x64xf32, #tpu.memory_space<vmem>> -> memref<1x64xf32, #tpu.memory_space<vmem>>
    %66 = tpu.memref_slice %arg9[%c1_i32_38] : memref<8x!tpu.dma_semaphore, #tpu.memory_space<semaphore_mem>> -> memref<1x!tpu.dma_semaphore, #tpu.memory_space<semaphore_mem>>
    %67 = tpu.memref_squeeze %66 : memref<1x!tpu.dma_semaphore, #tpu.memory_space<semaphore_mem>> -> memref<!tpu.dma_semaphore, #tpu.memory_space<semaphore_mem>>
    tpu.wait_dma2 semaphore(%67 : memref<!tpu.dma_semaphore, #tpu.memory_space<semaphore_mem>>) src(%64 : memref<1x64xf32, #tpu.memory_space<any>>) dst(%65 : memref<1x64xf32, #tpu.memory_space<vmem>>)
    %c2_i32_42 = arith.constant 2 : i32
    %c0_i32_43 = arith.constant 0 : i32
    %68 = tpu.memref_slice %arg3[%20, %c0_i32_43] : memref<1000x64xf32, #tpu.memory_space<any>> -> memref<1x64xf32, #tpu.memory_space<any>>
    %c2_i32_44 = arith.constant 2 : i32
    %c0_i32_45 = arith.constant 0 : i32
    %69 = tpu.memref_slice %arg7[%c2_i32_44, %c0_i32_45] : memref<8x64xf32, #tpu.memory_space<vmem>> -> memref<1x64xf32, #tpu.memory_space<vmem>>
    %70 = tpu.memref_slice %arg9[%c2_i32_42] : memref<8x!tpu.dma_semaphore, #tpu.memory_space<semaphore_mem>> -> memref<1x!tpu.dma_semaphore, #tpu.memory_space<semaphore_mem>>
    %71 = tpu.memref_squeeze %70 : memref<1x!tpu.dma_semaphore, #tpu.memory_space<semaphore_mem>> -> memref<!tpu.dma_semaphore, #tpu.memory_space<semaphore_mem>>
    tpu.wait_dma2 semaphore(%71 : memref<!tpu.dma_semaphore, #tpu.memory_space<semaphore_mem>>) src(%68 : memref<1x64xf32, #tpu.memory_space<any>>) dst(%69 : memref<1x64xf32, #tpu.memory_space<vmem>>)
    %c3_i32_46 = arith.constant 3 : i32
    %c0_i32_47 = arith.constant 0 : i32
    %72 = tpu.memref_slice %arg3[%27, %c0_i32_47] : memref<1000x64xf32, #tpu.memory_space<any>> -> memref<1x64xf32, #tpu.memory_space<any>>
    %c3_i32_48 = arith.constant 3 : i32
    %c0_i32_49 = arith.constant 0 : i32
    %73 = tpu.memref_slice %arg7[%c3_i32_48, %c0_i32_49] : memref<8x64xf32, #tpu.memory_space<vmem>> -> memref<1x64xf32, #tpu.memory_space<vmem>>
    %74 = tpu.memref_slice %arg9[%c3_i32_46] : memref<8x!tpu.dma_semaphore, #tpu.memory_space<semaphore_mem>> -> memref<1x!tpu.dma_semaphore, #tpu.memory_space<semaphore_mem>>
    %75 = tpu.memref_squeeze %74 : memref<1x!tpu.dma_semaphore, #tpu.memory_space<semaphore_mem>> -> memref<!tpu.dma_semaphore, #tpu.memory_space<semaphore_mem>>
    tpu.wait_dma2 semaphore(%75 : memref<!tpu.dma_semaphore, #tpu.memory_space<semaphore_mem>>) src(%72 : memref<1x64xf32, #tpu.memory_space<any>>) dst(%73 : memref<1x64xf32, #tpu.memory_space<vmem>>)
    %c4_i32_50 = arith.constant 4 : i32
    %c0_i32_51 = arith.constant 0 : i32
    %76 = tpu.memref_slice %arg3[%34, %c0_i32_51] : memref<1000x64xf32, #tpu.memory_space<any>> -> memref<1x64xf32, #tpu.memory_space<any>>
    %c4_i32_52 = arith.constant 4 : i32
    %c0_i32_53 = arith.constant 0 : i32
    %77 = tpu.memref_slice %arg7[%c4_i32_52, %c0_i32_53] : memref<8x64xf32, #tpu.memory_space<vmem>> -> memref<1x64xf32, #tpu.memory_space<vmem>>
    %78 = tpu.memref_slice %arg9[%c4_i32_50] : memref<8x!tpu.dma_semaphore, #tpu.memory_space<semaphore_mem>> -> memref<1x!tpu.dma_semaphore, #tpu.memory_space<semaphore_mem>>
    %79 = tpu.memref_squeeze %78 : memref<1x!tpu.dma_semaphore, #tpu.memory_space<semaphore_mem>> -> memref<!tpu.dma_semaphore, #tpu.memory_space<semaphore_mem>>
    tpu.wait_dma2 semaphore(%79 : memref<!tpu.dma_semaphore, #tpu.memory_space<semaphore_mem>>) src(%76 : memref<1x64xf32, #tpu.memory_space<any>>) dst(%77 : memref<1x64xf32, #tpu.memory_space<vmem>>)
    %c5_i32_54 = arith.constant 5 : i32
    %c0_i32_55 = arith.constant 0 : i32
    %80 = tpu.memref_slice %arg3[%41, %c0_i32_55] : memref<1000x64xf32, #tpu.memory_space<any>> -> memref<1x64xf32, #tpu.memory_space<any>>
    %c5_i32_56 = arith.constant 5 : i32
    %c0_i32_57 = arith.constant 0 : i32
    %81 = tpu.memref_slice %arg7[%c5_i32_56, %c0_i32_57] : memref<8x64xf32, #tpu.memory_space<vmem>> -> memref<1x64xf32, #tpu.memory_space<vmem>>
    %82 = tpu.memref_slice %arg9[%c5_i32_54] : memref<8x!tpu.dma_semaphore, #tpu.memory_space<semaphore_mem>> -> memref<1x!tpu.dma_semaphore, #tpu.memory_space<semaphore_mem>>
    %83 = tpu.memref_squeeze %82 : memref<1x!tpu.dma_semaphore, #tpu.memory_space<semaphore_mem>> -> memref<!tpu.dma_semaphore, #tpu.memory_space<semaphore_mem>>
    tpu.wait_dma2 semaphore(%83 : memref<!tpu.dma_semaphore, #tpu.memory_space<semaphore_mem>>) src(%80 : memref<1x64xf32, #tpu.memory_space<any>>) dst(%81 : memref<1x64xf32, #tpu.memory_space<vmem>>)
    %c6_i32_58 = arith.constant 6 : i32
    %c0_i32_59 = arith.constant 0 : i32
    %84 = tpu.memref_slice %arg3[%48, %c0_i32_59] : memref<1000x64xf32, #tpu.memory_space<any>> -> memref<1x64xf32, #tpu.memory_space<any>>
    %c6_i32_60 = arith.constant 6 : i32
    %c0_i32_61 = arith.constant 0 : i32
    %85 = tpu.memref_slice %arg7[%c6_i32_60, %c0_i32_61] : memref<8x64xf32, #tpu.memory_space<vmem>> -> memref<1x64xf32, #tpu.memory_space<vmem>>
    %86 = tpu.memref_slice %arg9[%c6_i32_58] : memref<8x!tpu.dma_semaphore, #tpu.memory_space<semaphore_mem>> -> memref<1x!tpu.dma_semaphore, #tpu.memory_space<semaphore_mem>>
    %87 = tpu.memref_squeeze %86 : memref<1x!tpu.dma_semaphore, #tpu.memory_space<semaphore_mem>> -> memref<!tpu.dma_semaphore, #tpu.memory_space<semaphore_mem>>
    tpu.wait_dma2 semaphore(%87 : memref<!tpu.dma_semaphore, #tpu.memory_space<semaphore_mem>>) src(%84 : memref<1x64xf32, #tpu.memory_space<any>>) dst(%85 : memref<1x64xf32, #tpu.memory_space<vmem>>)
    %c7_i32_62 = arith.constant 7 : i32
    %c0_i32_63 = arith.constant 0 : i32
    %88 = tpu.memref_slice %arg3[%55, %c0_i32_63] : memref<1000x64xf32, #tpu.memory_space<any>> -> memref<1x64xf32, #tpu.memory_space<any>>
    %c7_i32_64 = arith.constant 7 : i32
    %c0_i32_65 = arith.constant 0 : i32
    %89 = tpu.memref_slice %arg7[%c7_i32_64, %c0_i32_65] : memref<8x64xf32, #tpu.memory_space<vmem>> -> memref<1x64xf32, #tpu.memory_space<vmem>>
    %90 = tpu.memref_slice %arg9[%c7_i32_62] : memref<8x!tpu.dma_semaphore, #tpu.memory_space<semaphore_mem>> -> memref<1x!tpu.dma_semaphore, #tpu.memory_space<semaphore_mem>>
    %91 = tpu.memref_squeeze %90 : memref<1x!tpu.dma_semaphore, #tpu.memory_space<semaphore_mem>> -> memref<!tpu.dma_semaphore, #tpu.memory_space<semaphore_mem>>
    tpu.wait_dma2 semaphore(%91 : memref<!tpu.dma_semaphore, #tpu.memory_space<semaphore_mem>>) src(%88 : memref<1x64xf32, #tpu.memory_space<any>>) dst(%89 : memref<1x64xf32, #tpu.memory_space<vmem>>)
    %c0 = arith.constant 0 : index
    %c0_66 = arith.constant 0 : index
    %92 = vector.load %arg8[%c0, %c0_66] : memref<4x64xf32, #tpu.memory_space<vmem>>, vector<4x64xf32>
    %c0_67 = arith.constant 0 : index
    %c0_68 = arith.constant 0 : index
    %93 = vector.load %arg2[%c0_67, %c0_68] : memref<8x4xf32, #tpu.memory_space<vmem>>, vector<8x4xf32>
    %c0_69 = arith.constant 0 : index
    %c0_70 = arith.constant 0 : index
    %94 = vector.load %arg7[%c0_69, %c0_70] : memref<8x64xf32, #tpu.memory_space<vmem>>, vector<8x64xf32>
    %cst = arith.constant dense<0.000000e+00> : vector<4x64xf32>
    %95 = tpu.matmul %93, %94, %cst {dimension_numbers = #tpu.dot_dimension_numbers<[0], [0], [1], [1], [0, 1, 1, 1], [], []>} : vector<8x4xf32>, vector<8x64xf32>, vector<4x64xf32> -> vector<4x64xf32>
    %96 = arith.addf %92, %95 : vector<4x64xf32>
    %c0_71 = arith.constant 0 : index
    %c0_72 = arith.constant 0 : index
    %97 = vector.load %arg8[%c0_71, %c0_72] : memref<4x64xf32, #tpu.memory_space<vmem>>, vector<4x64xf32>
    tpu.vector_store %arg8[%c0_71, %c0_72], %96 {strides = array<i32>} : memref<4x64xf32, #tpu.memory_space<vmem>>, vector<4x64xf32>,
    %c2_i32_73 = arith.constant 2 : i32
    %98 = arith.cmpi eq, %arg0, %c2_i32_73 : i32
    %99 = arith.extui %98 : i1 to i32
    %c0_i32_74 = arith.constant 0 : i32
    %100 = arith.cmpi ne, %99, %c0_i32_74 : i32
    scf.if %100 {
      %c0_75 = arith.constant 0 : index
      %c0_76 = arith.constant 0 : index
      %101 = vector.load %arg8[%c0_75, %c0_76] : memref<4x64xf32, #tpu.memory_space<vmem>>, vector<4x64xf32>
      %c0_77 = arith.constant 0 : index
      %c0_78 = arith.constant 0 : index
      %102 = vector.load %arg4[%c0_77, %c0_78] : memref<64x128xf32, #tpu.memory_space<vmem>>, vector<64x128xf32>
      %cst_79 = arith.constant dense<0.000000e+00> : vector<4x128xf32>
      %103 = tpu.matmul %101, %102, %cst_79 {dimension_numbers = #tpu.dot_dimension_numbers<[1], [0], [0], [1], [0, 0, 1, 1], [], []>} : vector<4x64xf32>, vector<64x128xf32>, vector<4x128xf32> -> vector<4x128xf32>
      %c0_80 = arith.constant 0 : index
      %c0_81 = arith.constant 0 : index
      %104 = vector.load %arg5[%c0_80, %c0_81] : memref<1x128xf32, #tpu.memory_space<vmem>>, vector<1x128xf32>
      %105 = vector.broadcast %104 : vector<1x128xf32> to vector<4x128xf32>
      %106 = arith.addf %103, %105 : vector<4x128xf32>
      %c0_82 = arith.constant 0 : index
      %c0_83 = arith.constant 0 : index
      %107 = vector.load %arg6[%c0_82, %c0_83] : memref<4x128xf32, #tpu.memory_space<vmem>>, vector<4x128xf32>
      tpu.vector_store %arg6[%c0_82, %c0_83], %106 {strides = array<i32>} : memref<4x128xf32, #tpu.memory_space<vmem>>, vector<4x128xf32>,
    } else {
    }
    return
  }
  func.func @transform_0(%arg0: i32, %arg1: memref<24xi32, #tpu.memory_space<smem>>) -> (i32, i32) {
    %c0_i32 = arith.constant 0 : i32
    %c0_i32_0 = arith.constant 0 : i32
    return %arg0, %c0_i32 : i32, i32
  }
  func.func @transform_2(%arg0: i32, %arg1: memref<24xi32, #tpu.memory_space<smem>>) -> (i32, i32) {
    %c0_i32 = arith.constant 0 : i32
    %c0_i32_0 = arith.constant 0 : i32
    %c0_i32_1 = arith.constant 0 : i32
    return %c0_i32, %c0_i32_0 : i32, i32
  }
  func.func @transform_3(%arg0: i32, %arg1: memref<24xi32, #tpu.memory_space<smem>>) -> (i32, i32) {
    %c0_i32 = arith.constant 0 : i32
    %c0_i32_0 = arith.constant 0 : i32
    %c0_i32_1 = arith.constant 0 : i32
    return %c0_i32, %c0_i32_0 : i32, i32
  }
  func.func @transform_4(%arg0: i32, %arg1: memref<24xi32, #tpu.memory_space<smem>>) -> (i32, i32) {
    %c0_i32 = arith.constant 0 : i32
    %c0_i32_0 = arith.constant 0 : i32
    %c0_i32_1 = arith.constant 0 : i32
    return %c0_i32, %c0_i32_0 : i32, i32
  }
}

</mosaic_0001>

<bundles_post_ra>
// kernel: tpu_custom_call.1
= control target key start
LH: loop header
LB: loop body
LE: loop exit
PB: predicated region body
PF: predicated region fallthrough
CT: control target
= control target key end

     0   :  { %s1287_s0 = inlined_call_operand.vmem [shape: s32[24], index: 0, kind: input, shape index: {}]   ;;  %s1288_s1 = inlined_call_operand.vmem [shape: f32[24,4], index: 1, kind: input, shape index: {}]   ;;  %s1289_s2 = inlined_call_operand.vmem [shape: f32[1000,64], index: 2, kind: input, shape index: {}]   ;;  %s1290_s3 = inlined_call_operand.vmem [shape: f32[64,128], index: 3, kind: input, shape index: {}]   ;;  %s1291_s4 = inlined_call_operand.vmem [shape: f32[1,128], index: 4, kind: input, shape index: {}]   ;;  %s1292_s5 = inlined_call_operand.hbm [shape: f32[4,128], index: 5, kind: output, shape index: {}]  }
   0x1   :  { %s10_s20 = sshll.u32 %s1287_s0, 4  ;;  %s11_s20 = int_to_ptr.vmem [resolvable:$true] %s10_s20 }
   0x2   :  { %s1070_s21 = scalar_lea.vmem %s11_s20, 16  ;;  %p1075_p1 = scmp.lt.s32.totalorder %s11_s20, %s11_s20 }
   0x3   :  { %p1071_p0 = scmp.ne.s32.totalorder %s11_s20, %s1070_s21  ;;  %p1076_p2 = scmp.lt.s32.totalorder %s1070_s21, %s1070_s21 }
   0x5   :  { %p1077_p3 = por %p1076_p2, %p1075_p1 }
   0x7   :  { %p1078_p4 = pnand %p1077_p3, %p1071_p0 }
   0x9   :  { %1081 = shalt.err (!%p1078_p4)  }
   0xa   :  { %s1138_s22 = smov [#allocation6]  }
   0xb   :  { %13 = dma.vmem_to_smem %s11_s20, 16, %s1138_s22, [#allocation5] }
   0xc   :  { %1112 = dma.done.wait [#allocation5], 16 }
   0xd   :  { %1113 = vsyncadd [#allocation5], 4294967280 }
   0xe   :  { %15 = sfence }
   0xf   :  { %16 = vsyncpa [#allocation8], 0  ;;  %s1179_s23 = smov 0  }
  0x10 LB: > { %s1185_s0 = sadd.s32 4294967295, %s1136_s23   ;;  %p981_p5 = scmp.ge.s32.totalorder %s1136_s23, 1  ;;  %s1136_s23 = sphi %s1179_s23, %s22_s23  }
  0x11   : > { %p140_p6 = scmp.lt.s32.totalorder %s1136_s23, 4 }
  0x13   : > { %p141_p7 = pnand %p981_p5, %p140_p6 }
  0x14   : > { %p158_p8 = scmp.lt.s32.totalorder (!%p141_p7), %s1185_s0, 2  ;;  %p983_p9 = scmp.ne.s32.totalorder (!%p141_p7), %s1185_s0, 0 }
  0x15   : > { %144 = sbr.rel (%p141_p7) target bundleno = 725 (0x2d5), region = 32 }
  0x1c   : > { %s159_s24 = scalar_select %p158_p8, %s1185_s0, 2 }
  0x1d   : > { %165 = sbr.rel (%p983_p9) target bundleno = 36 (0x24), region = 36  ;;  %vm166_vm0 = vcmask (!%p983_p9), 519168   ;;  %v1139_v0 = vmov (!%p983_p9), 0.0  }
  0x1e   : > { %s982_s25 = sshll.u32 %s159_s24, 3  ;;  %167 = vst.msk [vmem:[#allocation3] sm:$0xf] (!%p983_p9), %vm166_vm0, %v1139_v0 }
  0x1f   : > { %s1194_s28 = scalar_lea.vmem %s1288_s1, %s982_s25 }
  0x24 PF: > { %s1198_s29 = sshll.u32 %s1185_s0, 3 }
  0x25   : > { %s169_s30 = sld [smem:[#allocation6 + %s1198_s29]] }
  0x2b   : > { %s170_s8 = scalar_lea.vmem %s1289_s2, %s169_s30 }
  0x2c   : > { %v188_v1 = vld [vmem:[%s170_s8] sm:$0x1] }
  0x2d   : > { %189 = vst [vmem:[#allocation2] sm:$0x1] %v188_v1 }
  0x2e   : > { %214 = vsyncadd [#allocation4], 16  ;;  %s215_s9 = sadd.s32 1, %s1198_s29 }
  0x2f   : > { %s216_s10 = sld [smem:[#allocation6 + %s215_s9]] }
  0x35   : > { %s217_s13 = scalar_lea.vmem %s1289_s2, %s216_s10 }
  0x36   : > { %v237_v2 = vld [vmem:[%s217_s13] sm:$0x1] }
  0x37   : > { %238 = vst [vmem:[#allocation2 + $0x1] sm:$0x1] %v237_v2 }
  0x38   : > { %263 = vsyncadd [#allocation4 + $0x1], 16  ;;  %s264_s14 = sadd.s32 2, %s1198_s29 }
  0x39   : > { %s265_s15 = sld [smem:[#allocation6 + %s264_s14]] }
  0x3f   : > { %s266_s18 = scalar_lea.vmem %s1289_s2, %s265_s15 }
  0x40   : > { %v286_v3 = vld [vmem:[%s266_s18] sm:$0x1] }
  0x41   : > { %287 = vst [vmem:[#allocation2 + $0x2] sm:$0x1] %v286_v3 }
  0x42   : > { %312 = vsyncadd [#allocation4 + $0x2], 16  ;;  %s313_s19 = sadd.s32 3, %s1198_s29 }
  0x43   : > { %s314_s20 = sld [smem:[#allocation6 + %s313_s19]] }
  0x49   : > { %s315_s24 = scalar_lea.vmem %s1289_s2, %s314_s20 }
  0x4a   : > { %v335_v4 = vld [vmem:[%s315_s24] sm:$0x1] }
  0x4b   : > { %336 = vst [vmem:[#allocation2 + $0x3] sm:$0x1] %v335_v4 }
  0x4c   : > { %361 = vsyncadd [#allocation4 + $0x3], 16  ;;  %s362_s25 = sadd.s32 4, %s1198_s29 }
  0x4d   : > { %s363_s26 = sld [smem:[#allocation6 + %s362_s25]] }
  0x53   : > { %s364_s6 = scalar_lea.vmem %s1289_s2, %s363_s26 }
  0x54   : > { %v384_v5 = vld [vmem:[%s364_s6] sm:$0x1] }
  0x55   : > { %385 = vst [vmem:[#allocation2 + $0x4] sm:$0x1] %v384_v5 }
  0x56   : > { %410 = vsyncadd [#allocation4 + $0x4], 16  ;;  %s411_s7 = sadd.s32 5, %s1198_s29 }
  0x57   : > { %s412_s8 = sld [smem:[#allocation6 + %s411_s7]] }
  0x5d   : > { %s413_s11 = scalar_lea.vmem %s1289_s2, %s412_s8 }
  0x5e   : > { %v433_v6 = vld [vmem:[%s413_s11] sm:$0x1] }
  0x5f   : > { %434 = vst [vmem:[#allocation2 + $0x5] sm:$0x1] %v433_v6 }
  0x60   : > { %459 = vsyncadd [#allocation4 + $0x5], 16  ;;  %s460_s12 = sadd.s32 6, %s1198_s29 }
  0x61   : > { %s461_s13 = sld [smem:[#allocation6 + %s460_s12]] }
  0x67   : > { %s462_s16 = scalar_lea.vmem %s1289_s2, %s461_s13 }
  0x68   : > { %v482_v7 = vld [vmem:[%s462_s16] sm:$0x1] }
  0x69   : > { %483 = vst [vmem:[#allocation2 + $0x6] sm:$0x1] %v482_v7 }
  0x6a   : > { %508 = vsyncadd [#allocation4 + $0x6], 16  ;;  %s509_s17 = sadd.s32 7, %s1198_s29 }
  0x6b   : > { %s510_s18 = sld [smem:[#allocation6 + %s509_s17]] }
  0x71   : > { %s511_s21 = scalar_lea.vmem %s1289_s2, %s510_s18 }
  0x72   : > { %v531_v8 = vld [vmem:[%s511_s21] sm:$0x1] }
  0x73   : > { %532 = vst [vmem:[#allocation2 + $0x7] sm:$0x1] %v531_v8 }
  0x74   : > { %557 = vsyncadd [#allocation4 + $0x7], 16 }
  0x75   : > { %1114 = dma.done.wait [#allocation4], 16 }
  0x76   : > { %1115 = vsyncadd [#allocation4], 4294967280 }
  0x77   : > { %1116 = dma.done.wait [#allocation4 + $0x1], 16 }
  0x78   : > { %1117 = vsyncadd [#allocation4 + $0x1], 4294967280 }
  0x79   : > { %1118 = dma.done.wait [#allocation4 + $0x2], 16 }
  0x7a   : > { %1119 = vsyncadd [#allocation4 + $0x2], 4294967280 }
  0x7b   : > { %1120 = dma.done.wait [#allocation4 + $0x3], 16 }
  0x7c   : > { %1121 = vsyncadd [#allocation4 + $0x3], 4294967280 }
  0x7d   : > { %1122 = dma.done.wait [#allocation4 + $0x4], 16 }
  0x7e   : > { %1123 = vsyncadd [#allocation4 + $0x4], 4294967280 }
  0x7f   : > { %1124 = dma.done.wait [#allocation4 + $0x5], 16 }
  0x80   : > { %1125 = vsyncadd [#allocation4 + $0x5], 4294967280 }
  0x81   : > { %1126 = dma.done.wait [#allocation4 + $0x6], 16 }
  0x82   : > { %1127 = vsyncadd [#allocation4 + $0x6], 4294967280 }
  0x83   : > { %1128 = dma.done.wait [#allocation4 + $0x7], 16 }
  0x84   : > { %1129 = vsyncadd [#allocation4 + $0x7], 4294967280  ;;  %v1140_v9 = vmov 0.0   ;;  %vm1141_vm1 = vmmov 0   ;;  %v576_v10 = vld [vmem:[%s1194_s28] sm:$0xff]  ;;  %vm610_vm2 = vcmask 64512  }
  0x85   : > { %1012 = vmatprep.subr.mxu0 %v1140_v9  ;;  %1014 = vmatprep.mubr.msk.f32.mxu0 %vm1141_vm1, %v1140_v9  ;;  %v577_v11 = vld [vmem:[#allocation2] sm:$0xff]  ;;  %v575_v13 = vld [vmem:[#allocation3] sm:$0xf]  ;;  %vm685_vm3 = vcmask 519168   ;;  %p986_p10 = scmp.ne.s32.totalorder %s1185_s0, 2 }
  0x86   : > { %578 = vxpose.xlu0.b32.start.end [1/1] (short) (narrow) %v576_v10, 8  ;;  %1013 = vmatpush3.msra.mxu0 %v577_v11  ;;  %v692_v17 = vld [vmem:[%s1290_s3] sm:$0xff] (!%p986_p10)  ;;  %v693_v18 = vld [vmem:[%s1290_s3 + $0x8] sm:$0xff] (!%p986_p10)  ;;  %v694_v19 = vld [vmem:[%s1290_s3 + $0x10] sm:$0xff] (!%p986_p10)  ;;  %v1142_v20 = vmov (!%p986_p10), 0.0|0.0   ;;  %vm1143_vm4 = vmmov (!%p986_p10), 0  }
  0x87   : > { %1036 = vmatprep.subr.bf16.mxu0 (!%p986_p10), %v1142_v20  ;;  %v1037_v21 = vpack.c.bf16 (!%p986_p10), %v693_v18, %v692_v17  ;;  %v695_v22 = vld [vmem:[%s1290_s3 + $0x18] sm:$0xff] (!%p986_p10)  ;;  %v1144_v23 = vmov (!%p986_p10), 0.0   ;;  %v696_v25 = vld [vmem:[%s1290_s3 + $0x20] sm:$0xff] (!%p986_p10)  ;;  %v697_v26 = vld [vmem:[%s1290_s3 + $0x28] sm:$0xff] (!%p986_p10)  ;;  %vm707_vm5 = vcmask (!%p986_p10), 523264  }
  0x88   : > { %v1040_v24 = vpack.c.bf16 (!%p986_p10), %v695_v22, %v694_v19  ;;  %v1043_v27 = vpack.c.bf16 (!%p986_p10), %v697_v26, %v696_v25  ;;  %v698_v28 = vld [vmem:[%s1290_s3 + $0x30] sm:$0xff] (!%p986_p10)  ;;  %v699_v29 = vld [vmem:[%s1290_s3 + $0x38] sm:$0xff] (!%p986_p10)  ;;  %v987_v32 = vld [vmem:[%s1291_s4] ss:$0 sm:$0xff] (!%p986_p10) }
  0x89   : > { %v1046_v30 = vpack.c.bf16 (!%p986_p10), %v699_v29, %v698_v28 }
 0x106   : > { %v594_v12 = vpop.trf.xlu0 }
 0x107   : > { %1015 = vmatmul.mubr.msk.f32.vlgmr.msra.gmra.mrb[0].mxu0 %vm610_vm2, %v594_v12 }
 0x108   : > { %1033 = vmatprep.mubr.msk.f32.mxu0 (!%p986_p10), %vm1143_vm4, %v1144_v23  ;;  %1038 = vmatpush3.bf16.msra.mxu0 (!%p986_p10), %v1037_v21 }
 0x109   : > { %1039 = vmatprep.subr.bf16.mxu0 (!%p986_p10), %v1142_v20 }
 0x10c   : > { %1041 = vmatpush3.bf16.msra.mxu0 (!%p986_p10), %v1040_v24 }
 0x10d   : > { %1042 = vmatprep.subr.bf16.mxu0 (!%p986_p10), %v1142_v20 }
 0x110   : > { %1044 = vmatpush3.bf16.msra.mxu0 (!%p986_p10), %v1043_v27 }
 0x111   : > { %1045 = vmatprep.subr.bf16.mxu0 (!%p986_p10), %v1142_v20 }
 0x114   : > { %1047 = vmatpush3.bf16.msra.mxu0 (!%p986_p10), %v1046_v30 }
 0x1d7   : > { %690 = sbr.rel (%p986_p10) target bundleno = 700 (0x2bc), region = 280 }
 0x1da   : > { %v680_v14 = vpop.f32.mrb[0].mxu0 }
 0x1db   : > { %v684_v15 = vadd.f32 %v680_v14, %v575_v13  ;;  %v1016_v16 = vpop.f32.mrb[1].mxu0 }
 0x1dd   : > { %686 = vst.msk [vmem:[#allocation3] sm:$0xf] %vm685_vm3, %v684_v15 }
 0x1e4   : > { %v691_v31 = vld [vmem:[#allocation3] sm:$0xf] }
 0x1e5   : > { %1034 = vmatmul.mubr.msk.f32.vlgmr.msra.gmra.mrb[0].mxu0 %vm707_vm5, %v691_v31 }
 0x2b8   : > { %v777_v33 = vpop.f32.mrb[0].mxu0 }
 0x2b9   : > { %v778_v34 = vadd.f32 %v987_v32, %v777_v33  ;;  %v1035_v35 = vpop.f32.mrb[1].mxu0 }
 0x2bb   : > { %781 = vst [vmem:[#allocation7] sm:$0xf] %v778_v34 }
 0x2bc PF: > { %p1052_p11 = scmp.eq.s32.totalorder %s1185_s0, 2  ;;  %s1145_s16 = smov [#allocation7]  }
 0x2bd   : > { %s789_s17 = sshll.u32 %s1145_s16, 4  ;;  %s790_s17 = int_to_ptr.vmem [resolvable:$true] %s789_s17 }
 0x2be   : > { %s1082_s18 = scalar_lea.vmem %s790_s17, 64  ;;  %p1089_p1 = scmp.lt.s32.totalorder %s790_s17, %s790_s17 }
 0x2bf   : > { %p1083_p12 = scmp.ne.s32.totalorder %s790_s17, %s1082_s18  ;;  %p1090_p2 = scmp.lt.s32.totalorder %s1082_s18, %s1082_s18 }
 0x2c1   : > { %p1084_p13 = pnand %p1083_p12, %p1052_p11  ;;  %p1091_p3 = por %p1090_p2, %p1089_p1 }
 0x2c3   : > { %p1085_p0 = pneg %p1084_p13 }
 0x2c5   : > { %p1092_p4 = pnand %p1091_p3, %p1085_p0 }
 0x2c7   : > { %1095 = shalt.err (!%p1092_p4)
}
 0x2c8   : > { %s1096_s21 = scalar_lea.hbm %s1292_s5, 64 }
 0x2c9   : > { %p1097_p5 = scmp.ne.s32.totalorder %s1292_s5, %s1096_s21  ;;  %p1102_p8 = scmp.lt.u32.totalorder %s1096_s21, %s1292_s5 }
 0x2cb   : > { %p1098_p6 = pnand %p1097_p5, %p1052_p11 }
 0x2cd   : > { %p1099_p7 = pneg %p1098_p6 }
 0x2cf   : > { %p1104_p9 = pnand %p1102_p8, %p1099_p7 }
 0x2d1   : > { %1107 = shalt.err (!%p1104_p9)
}
 0x2d2   : > { %1049 = dma.vmem_to_hbm [thread:$0]  (%p1052_p11), %s790_s17, 64, %s1292_s5, [#allocation8]  }
 0x2d3   : > { %1131 = dma.done.wait (%p1052_p11), [#allocation8], 64  }
 0x2d4   : > { %1133 = vsyncadd (%p1052_p11), [#allocation8], 4294967232 }
 0x2d5 PF: > { %s22_s23 = sadd.s32 1, %s1136_s23  }
 0x2d6   : > { %p19_p10 = scmp.ge.s32.totalorder %s22_s23, 5  }
 0x2d8   :  { %21 = sbr.rel (!%p19_p10) target bundleno = 16 (0x10), region = 416 }
 0x2df   :  { %802 = vsyncpa [#allocation8], 1 }
 0x2e0   :  { %804 = vsyncpa [#allocation8 + $0x1], 1 }
 0x2e1   :  { %805 = vsyncmov [#allocation4] }
 0x2e4   :  { %s806_s27 = vpop.sfrf %805 }
 0x2e5   :  { %p993_p12 = scmp.ne.s32.totalorder %s806_s27, 0 }
 0x2e7   :  { %810 = shalt.err (%p993_p12)  }
 0x2e8   :  { %812 = vsyncmov [#allocation4 + $0x1] }
 0x2eb   :  { %s813_s30 = vpop.sfrf %812 }
 0x2ec   :  { %p994_p13 = scmp.ne.s32.totalorder %s813_s30, 0 }
 0x2ee   :  { %817 = shalt.err (%p994_p13)  }
 0x2ef   :  { %819 = vsyncmov [#allocation4 + $0x2] }
 0x2f2   :  { %s820_s0 = vpop.sfrf %819 }
 0x2f3   :  { %p995_p11 = scmp.ne.s32.totalorder %s820_s0, 0 }
 0x2f5   :  { %824 = shalt.err (%p995_p11)  }
 0x2f6   :  { %826 = vsyncmov [#allocation4 + $0x3] }
 0x2f9   :  { %s827_s6 = vpop.sfrf %826 }
 0x2fa   :  { %p996_p0 = scmp.ne.s32.totalorder %s827_s6, 0 }
 0x2fc   :  { %831 = shalt.err (%p996_p0)  }
 0x2fd   :  { %833 = vsyncmov [#allocation4 + $0x4] }
 0x300   :  { %s834_s23 = vpop.sfrf %833 }
 0x301   :  { %p997_p1 = scmp.ne.s32.totalorder %s834_s23, 0 }
 0x303   :  { %838 = shalt.err (%p997_p1)  }
 0x304   :  { %840 = vsyncmov [#allocation4 + $0x5] }
 0x307   :  { %s841_s1 = vpop.sfrf %840 }
 0x308   :  { %p998_p2 = scmp.ne.s32.totalorder %s841_s1, 0 }
 0x30a   :  { %845 = shalt.err (%p998_p2)  }
 0x30b   :  { %847 = vsyncmov [#allocation4 + $0x6] }
 0x30e   :  { %s848_s2 = vpop.sfrf %847 }
 0x30f   :  { %p999_p3 = scmp.ne.s32.totalorder %s848_s2, 0 }
 0x311   :  { %852 = shalt.err (%p999_p3)  }
 0x312   :  { %854 = vsyncmov [#allocation4 + $0x7] }
 0x315   :  { %s855_s3 = vpop.sfrf %854 }
 0x316   :  { %p1000_p4 = scmp.ne.s32.totalorder %s855_s3, 0 }
 0x318   :  { %859 = shalt.err (%p1000_p4)  }

</bundles_post_ra>
